<compile_context>
chip_gen: v5e
topology: v5e:2x2
jax: 0.10.0
libtpu: 0.0.40
codegen_flags: <defaults>
</compile_context>

<pallas_src>
import functools

import jax
import jax.numpy as jnp
from jax.experimental import pallas as pl
from jax.experimental.pallas import tpu as pltpu

LANE = 128   # TPU lane width; class dim is padded up to a multiple of this.
FEAT = 512   # head input width
HID = 256    # head hidden width


def _round_up(x, m):
    return (x + m - 1) // m * m


# ----------------------------------------------------------------------------
# Pallas kernel: shared MLP head applied to all three modalities, stacked into
# a single matmul chain per layer.
#     head(x) = relu(x @ W1 + b1) @ W2p + b2p      (W2p/b2p lane-padded classes)
# Matmul operands bf16, accumulation / bias / ReLU in f32 (safe on v5e's VPU).
# ----------------------------------------------------------------------------
def head_kernel(img_ref, pt_ref, mesh_ref, w1_ref, b1_ref, w2_ref, b2_ref,
                out_ref):
    tm = img_ref.shape[0]
    # Stack the three modality tiles in VMEM -> ONE MXU weight-push per layer.
    x = jnp.concatenate([img_ref[...], pt_ref[...], mesh_ref[...]], axis=0)
    xb = x.astype(jnp.bfloat16)                               # in-kernel cast
    h = jnp.dot(xb, w1_ref[...], preferred_element_type=jnp.float32)
    h = jnp.maximum(h + b1_ref[...], 0.0)                     # f32 bias + ReLU
    y = jnp.dot(h.astype(jnp.bfloat16), w2_ref[...],
                preferred_element_type=jnp.float32) + b2_ref[...]   # [3*tm, Cp]
    # Single lane-dense stacked output slab [3, tm, Cp] (one writeback DMA).
    out_ref[0, :, :] = y[0 * tm:1 * tm, :]
    out_ref[1, :, :] = y[1 * tm:2 * tm, :]
    out_ref[2, :, :] = y[2 * tm:3 * tm, :]


def head_forward(img_feat, pt_feat, mesh_feat, head_params, num_classes,
                 *, row_tile=512):
    """Shared head on the three [B,512] features.

    Small B: one grid-less kernel call, everything VMEM-resident.
    Large B: row-tiled pipelined grid, weights resident, 'parallel' row axis.
    Returns (img_pred, pt_pred, mesh_pred), each [B, num_classes] f32.
    """
    B = img_feat.shape[0]
    w1, b1, w2p, b2p = head_params            # already bf16 / lane-padded
    c_pad = w2p.shape[1]

    cost = pl.CostEstimate(
        flops=2 * 3 * B * (FEAT * HID + HID * c_pad),
        transcendentals=0,
        bytes_accessed=(3 * B * FEAT * 4 + 3 * B * c_pad * 4
                        + (FEAT * HID + HID * c_pad) * 2
                        + (HID + c_pad) * 4),
    )

    feats = (img_feat.astype(jnp.float32),
             pt_feat.astype(jnp.float32),
             mesh_feat.astype(jnp.float32))

    if B <= row_tile:
        # Grid-less path: no pipeline prologue/epilogue, single invocation.
        vmem = pl.BlockSpec(memory_space=pltpu.MemorySpace.VMEM)
        out = pl.pallas_call(
            head_kernel,
            out_shape=jax.ShapeDtypeStruct((3, B, c_pad), jnp.float32),
            in_specs=[vmem] * 7,
            out_specs=vmem,
            cost_estimate=cost,
        )(*feats, w1, b1, w2p, b2p)
    else:
        # Row-tiled path: double-buffered feature tiles, weights resident via
        # constant index_map, rows sharded across TensorCores on v7x.
        tm = row_tile
        b_pad = _round_up(B, tm)
        if b_pad != B:
            feats = tuple(jnp.pad(f, ((0, b_pad - B), (0, 0))) for f in feats)
        feat_spec = pl.BlockSpec((tm, FEAT), lambda i: (i, 0))
        out = pl.pallas_call(
            head_kernel,
            out_shape=jax.ShapeDtypeStruct((3, b_pad, c_pad), jnp.float32),
            grid=(b_pad // tm,),
            in_specs=[feat_spec, feat_spec, feat_spec,
                      pl.BlockSpec((FEAT, HID), lambda i: (0, 0)),
                      pl.BlockSpec((1, HID), lambda i: (0, 0)),
                      pl.BlockSpec((HID, c_pad), lambda i: (0, 0)),
                      pl.BlockSpec((1, c_pad), lambda i: (0, 0))],
            out_specs=pl.BlockSpec((3, tm, c_pad), lambda i: (0, i, 0)),
            compiler_params=pltpu.CompilerParams(
                dimension_semantics=("parallel",)),
            cost_estimate=cost,
        )(*feats, w1, b1, w2p, b2p)
        out = out[:, :B, :]

    return (out[0, :, :num_classes],
            out[1, :, :num_classes],
            out[2, :, :num_classes])


# ----------------------------------------------------------------------------
# Parameters (PyTorch nn.Linear-style uniform init; W stored [in, out]).
# ----------------------------------------------------------------------------
def linear_params(key, fan_in, fan_out):
    kw, kb = jax.random.split(key)
    bound = 1.0 / jnp.sqrt(fan_in)
    w = jax.random.uniform(kw, (fan_in, fan_out), jnp.float32, -bound, bound)
    b = jax.random.uniform(kb, (1, fan_out), jnp.float32, -bound, bound)
    return w, b


def prepare_head_params(fc1, fc2):
    """One-time prep: bf16 weights, zero-pad class dim to 128 lanes (Cp=128)."""
    (w1, b1), (w2, b2) = fc1, fc2
    c = w2.shape[1]
    c_pad = _round_up(max(c, LANE), LANE)
    w2p = jnp.zeros((w2.shape[0], c_pad), jnp.float32).at[:, :c].set(w2)
    b2p = jnp.zeros((1, c_pad), jnp.float32).at[:, :c].set(b2)
    return (w1.astype(jnp.bfloat16), b1, w2p.astype(jnp.bfloat16), b2p)


# ----------------------------------------------------------------------------
# Backbone stand-ins.
# TODO(synk): the real img_net / pt_net / mesh_net architectures are injected
# modules external to CorrNet and are not reproduced here; they are modelled
# as deterministic linear projections onto the 512-d feature space (so they
# are intentionally NOT folded into the head kernel).
# ----------------------------------------------------------------------------
def backbone_project(x, w, b):
    B = x.shape[0]
    xf = x.reshape(B, -1).astype(jnp.float32)
    return xf @ w + b  # [B, 512]


def corrnet_forward(params, pt, views, centers, corners, normals,
                    neighbor_index, *, num_classes):
    B = views.shape[0]

    img_feat = backbone_project(views, *params["img_net"])            # [B,512]
    pt_feat = backbone_project(pt, *params["pt_net"])                 # [B,512]
    mesh_in = jnp.concatenate(
        [centers.reshape(B, -1), corners.reshape(B, -1),
         normals.reshape(B, -1),
         neighbor_index.reshape(B, -1).astype(jnp.float32)], axis=1)
    mesh_feat = backbone_project(mesh_in, *params["mesh_net"])        # [B,512]

    img_pred, pt_pred, mesh_pred = head_forward(
        img_feat, pt_feat, mesh_feat, params["head_padded"], num_classes)

    return img_pred, pt_pred, mesh_pred, img_feat, pt_feat, mesh_feat


# ----------------------------------------------------------------------------
if __name__ == "__main__":
    key = jax.random.PRNGKey(0)
    (k_in, k_img, k_pt, k_mesh, k_h1, k_h2, k_big) = jax.random.split(key, 7)

    B = 2
    NUM_CLASSES = 10
    H, W = 16, 16          # small "view" images (NCHW)
    N_PTS = 64             # point-cloud points
    N_FACES = 32           # mesh faces

    ki = jax.random.split(k_in, 6)
    views = jax.random.normal(ki[0], (B, 3, H, W), jnp.float32)
    pt = jax.random.normal(ki[1], (B, 3, N_PTS), jnp.float32)
    centers = jax.random.normal(ki[2], (B, 3, N_FACES), jnp.float32)
    corners = jax.random.normal(ki[3], (B, 9, N_FACES), jnp.float32)
    normals = jax.random.normal(ki[4], (B, 3, N_FACES), jnp.float32)
    neighbor_index = jax.random.randint(ki[5], (B, N_FACES, 3), 0, N_FACES,
                                        jnp.int32)

    mesh_in_dim = 3 * N_FACES + 9 * N_FACES + 3 * N_FACES + N_FACES * 3
    head_fc1 = linear_params(k_h1, 512, 256)
    head_fc2 = linear_params(k_h2, 256, NUM_CLASSES)
    params = {
        "img_net": linear_params(k_img, 3 * H * W, 512),
        "pt_net": linear_params(k_pt, 3 * N_PTS, 512),
        "mesh_net": linear_params(k_mesh, mesh_in_dim, 512),
        "head_fc1": head_fc1,          # f32 originals (reference check only)
        "head_fc2": head_fc2,
        "head_padded": prepare_head_params(head_fc1, head_fc2),
    }

    fwd = jax.jit(functools.partial(corrnet_forward, num_classes=NUM_CLASSES))
    outs = jax.block_until_ready(
        fwd(params, pt, views, centers, corners, normals, neighbor_index))

    img_pred, pt_pred, mesh_pred, img_feat, pt_feat, mesh_feat = outs
    assert img_pred.shape == (B, NUM_CLASSES)
    assert pt_pred.shape == (B, NUM_CLASSES)
    assert mesh_pred.shape == (B, NUM_CLASSES)
    assert img_feat.shape == (B, 512)
    assert pt_feat.shape == (B, 512)
    assert mesh_feat.shape == (B, 512)

    # --- reference checks (all three modalities) -----------------------------
    w1, b1 = params["head_fc1"]
    w2, b2 = params["head_fc2"]

    def ref_head_bf16(x):   # mirrors the kernel's bf16 quantization, f32 math
        f32 = jnp.float32
        xb = x.astype(jnp.bfloat16).astype(f32)
        w1b = w1.astype(jnp.bfloat16).astype(f32)
        h = jnp.maximum(xb @ w1b + b1, 0.0)
        hb = h.astype(jnp.bfloat16).astype(f32)
        w2b = w2.astype(jnp.bfloat16).astype(f32)
        return hb @ w2b + b2

    def ref_head_f32(x):    # full-precision head (semantics of the nn.Module)
        return jnp.maximum(x @ w1 + b1, 0.0) @ w2 + b2

    for feat, pred in ((img_feat, img_pred), (pt_feat, pt_pred),
                       (mesh_feat, mesh_pred)):
        assert jnp.allclose(ref_head_bf16(feat), pred, atol=2e-3, rtol=2e-3)
        assert jnp.allclose(ref_head_f32(feat), pred, atol=2e-2, rtol=2e-2)

    # --- exercise the row-tiled (large-batch) path on small shapes -----------
    kb = jax.random.split(k_big, 3)
    Bt = 16
    f_img = jax.random.normal(kb[0], (Bt, 512), jnp.float32)
    f_pt = jax.random.normal(kb[1], (Bt, 512), jnp.float32)
    f_mesh = jax.random.normal(kb[2], (Bt, 512), jnp.float32)
    tiled = jax.block_until_ready(
        head_forward(f_img, f_pt, f_mesh, params["head_padded"], NUM_CLASSES,
                     row_tile=8))
    for feat, pred in zip((f_img, f_pt, f_mesh), tiled):
        assert pred.shape == (Bt, NUM_CLASSES)
        assert jnp.allclose(ref_head_bf16(feat), pred, atol=2e-3, rtol=2e-3)
        assert jnp.allclose(ref_head_f32(feat), pred, atol=2e-2, rtol=2e-2)

    print("KERNEL_OK")
</pallas_src>

<mosaic_0001>
module attributes {stable_mosaic.version = 11 : i64} {
  func.func @head_kernel(%arg0: memref<2x512xf32, #tpu.memory_space<vmem>>, %arg1: memref<2x512xf32, #tpu.memory_space<vmem>>, %arg2: memref<2x512xf32, #tpu.memory_space<vmem>>, %arg3: memref<512x256xbf16, #tpu.memory_space<vmem>>, %arg4: memref<1x256xf32, #tpu.memory_space<vmem>>, %arg5: memref<256x128xbf16, #tpu.memory_space<vmem>>, %arg6: memref<1x128xf32, #tpu.memory_space<vmem>>, %arg7: memref<3x2x128xf32, #tpu.memory_space<vmem>>) attributes {dimension_semantics = [], scalar_prefetch = 0 : i64, scratch_operands = 0 : i64, tpu.core_type = #tpu.core_type<tc>} {
    %c0 = arith.constant 0 : index
    %c0_0 = arith.constant 0 : index
    %0 = vector.load %arg0[%c0, %c0_0] : memref<2x512xf32, #tpu.memory_space<vmem>>, vector<2x512xf32>
    %c0_1 = arith.constant 0 : index
    %c0_2 = arith.constant 0 : index
    %1 = vector.load %arg1[%c0_1, %c0_2] : memref<2x512xf32, #tpu.memory_space<vmem>>, vector<2x512xf32>
    %c0_3 = arith.constant 0 : index
    %c0_4 = arith.constant 0 : index
    %2 = vector.load %arg2[%c0_3, %c0_4] : memref<2x512xf32, #tpu.memory_space<vmem>>, vector<2x512xf32>
    %3 = tpu.concatenate %0, %1, %2 in 0 : vector<2x512xf32>, vector<2x512xf32>, vector<2x512xf32> -> vector<6x512xf32>
    %4 = arith.truncf %3 : vector<6x512xf32> to vector<6x512xbf16>
    %c0_5 = arith.constant 0 : index
    %c0_6 = arith.constant 0 : index
    %5 = vector.load %arg3[%c0_5, %c0_6] : memref<512x256xbf16, #tpu.memory_space<vmem>>, vector<512x256xbf16>
    %cst = arith.constant dense<0.000000e+00> : vector<6x256xf32>
    %6 = tpu.matmul %4, %5, %cst {dimension_numbers = #tpu.dot_dimension_numbers<[1], [0], [0], [1], [0, 0, 1, 1], [], []>} : vector<6x512xbf16>, vector<512x256xbf16>, vector<6x256xf32> -> vector<6x256xf32>
    %c0_7 = arith.constant 0 : index
    %c0_8 = arith.constant 0 : index
    %7 = vector.load %arg4[%c0_7, %c0_8] : memref<1x256xf32, #tpu.memory_space<vmem>>, vector<1x256xf32>
    %8 = vector.broadcast %7 : vector<1x256xf32> to vector<6x256xf32>
    %9 = arith.addf %6, %8 : vector<6x256xf32>
    %cst_9 = arith.constant 0.000000e+00 : f32
    %10 = vector.broadcast %cst_9 : f32 to vector<6x256xf32>
    %11 = arith.maximumf %9, %10 : vector<6x256xf32>
    %12 = arith.truncf %11 : vector<6x256xf32> to vector<6x256xbf16>
    %c0_10 = arith.constant 0 : index
    %c0_11 = arith.constant 0 : index
    %13 = vector.load %arg5[%c0_10, %c0_11] : memref<256x128xbf16, #tpu.memory_space<vmem>>, vector<256x128xbf16>
    %cst_12 = arith.constant dense<0.000000e+00> : vector<6x128xf32>
    %14 = tpu.matmul %12, %13, %cst_12 {dimension_numbers = #tpu.dot_dimension_numbers<[1], [0], [0], [1], [0, 0, 1, 1], [], []>} : vector<6x256xbf16>, vector<256x128xbf16>, vector<6x128xf32> -> vector<6x128xf32>
    %c0_13 = arith.constant 0 : index
    %c0_14 = arith.constant 0 : index
    %15 = vector.load %arg6[%c0_13, %c0_14] : memref<1x128xf32, #tpu.memory_space<vmem>>, vector<1x128xf32>
    %16 = vector.broadcast %15 : vector<1x128xf32> to vector<6x128xf32>
    %17 = arith.addf %14, %16 : vector<6x128xf32>
    %18 = vector.extract_strided_slice %17 {offsets = [0, 0], sizes = [2, 128], strides = [1, 1]} : vector<6x128xf32> to vector<2x128xf32>
    %c0_15 = arith.constant 0 : index
    %c0_16 = arith.constant 0 : index
    %c0_17 = arith.constant 0 : index
    %19 = vector.load %arg7[%c0_15, %c0_16, %c0_17] : memref<3x2x128xf32, #tpu.memory_space<vmem>>, vector<1x2x128xf32>
    %20 = vector.shape_cast %19 : vector<1x2x128xf32> to vector<2x128xf32>
    %21 = vector.shape_cast %18 : vector<2x128xf32> to vector<1x2x128xf32>
    tpu.vector_store %arg7[%c0_15, %c0_16, %c0_17], %21 {strides = array<i32>} : memref<3x2x128xf32, #tpu.memory_space<vmem>>, vector<1x2x128xf32>,
    %22 = vector.extract_strided_slice %17 {offsets = [2, 0], sizes = [2, 128], strides = [1, 1]} : vector<6x128xf32> to vector<2x128xf32>
    %c1 = arith.constant 1 : index
    %c0_18 = arith.constant 0 : index
    %c0_19 = arith.constant 0 : index
    %23 = vector.load %arg7[%c1, %c0_18, %c0_19] : memref<3x2x128xf32, #tpu.memory_space<vmem>>, vector<1x2x128xf32>
    %24 = vector.shape_cast %23 : vector<1x2x128xf32> to vector<2x128xf32>
    %25 = vector.shape_cast %22 : vector<2x128xf32> to vector<1x2x128xf32>
    tpu.vector_store %arg7[%c1, %c0_18, %c0_19], %25 {strides = array<i32>} : memref<3x2x128xf32, #tpu.memory_space<vmem>>, vector<1x2x128xf32>,
    %26 = vector.extract_strided_slice %17 {offsets = [4, 0], sizes = [2, 128], strides = [1, 1]} : vector<6x128xf32> to vector<2x128xf32>
    %c2 = arith.constant 2 : index
    %c0_20 = arith.constant 0 : index
    %c0_21 = arith.constant 0 : index
    %27 = vector.load %arg7[%c2, %c0_20, %c0_21] : memref<3x2x128xf32, #tpu.memory_space<vmem>>, vector<1x2x128xf32>
    %28 = vector.shape_cast %27 : vector<1x2x128xf32> to vector<2x128xf32>
    %29 = vector.shape_cast %26 : vector<2x128xf32> to vector<1x2x128xf32>
    tpu.vector_store %arg7[%c2, %c0_20, %c0_21], %29 {strides = array<i32>} : memref<3x2x128xf32, #tpu.memory_space<vmem>>, vector<1x2x128xf32>,
    return
  }
}

</mosaic_0001>

<bundles_post_ra>
// kernel: corrnet_forward.1
= control target key start
LH: loop header
LB: loop body
LE: loop exit
PB: predicated region body
PF: predicated region fallthrough
CT: control target
= control target key end

     0   :  { %vm61_vm0 = vcmask 1041408   ;;  %vm66_vm1 = vcmask 1043456   ;;  %s1656_s3 = inlined_call_operand.vmem [shape: bf16[512,256], index: 3, kind: input, shape index: {}]   ;;  %s1657_s0 = inlined_call_operand.vmem [shape: f32[2,512], index: 0, kind: input, shape index: {}]   ;;  %s1658_s1 = inlined_call_operand.vmem [shape: f32[2,512], index: 1, kind: input, shape index: {}]   ;;  %s1659_s2 = inlined_call_operand.vmem [shape: f32[2,512], index: 2, kind: input, shape index: {}]   ;;  %s1660_s5 = inlined_call_operand.vmem [shape: bf16[256,128], index: 5, kind: input, shape index: {}]   ;;  %s1661_s6 = inlined_call_operand.vmem [shape: f32[1,128], index: 6, kind: input, shape index: {}]   ;;  %s1662_s4 = inlined_call_operand.vmem [shape: f32[1,256], index: 4, kind: input, shape index: {}]   ;;  %s1663_s7 = inlined_call_operand.vmem [shape: f32[3,2,128], index: 7, kind: output, shape index: {}]  }
   0x1   :  { %v798_v0 = vld [vmem:[%s1656_s3 + $0x70] sm:$0xf]  ;;  %v1077_v1 = vld [vmem:[%s1656_s3 + $0x74] sm:$0xf0]  ;;  %v790_v11 = vld [vmem:[%s1656_s3 + $0x60] sm:$0xf] }
   0x2   :  { %v862_v2 = vld [vmem:[%s1656_s3 + $0xf0] sm:$0xf]  ;;  %v799_v3 = vor.u32 %v1077_v1, %v798_v0  ;;  %v1093_v4 = vld [vmem:[%s1656_s3 + $0xf4] sm:$0xf0]  ;;  %v1075_v13 = vld [vmem:[%s1656_s3 + $0x64] sm:$0xf0] }
   0x3   :  { %v926_v5 = vld [vmem:[%s1656_s3 + $0x170] sm:$0xf]  ;;  %v1109_v6 = vld [vmem:[%s1656_s3 + $0x174] sm:$0xf0]  ;;  %v863_v7 = vor.u32 %v1093_v4, %v862_v2  ;;  %v854_v14 = vld [vmem:[%s1656_s3 + $0xe0] sm:$0xf]  ;;  %v791_v16 = vor.u32 %v1075_v13, %v790_v11 }
   0x4   :  { %v927_v8 = vor.u32 %v1109_v6, %v926_v5  ;;  %v990_v9 = vld [vmem:[%s1656_s3 + $0x1f0] sm:$0xf]  ;;  %v1125_v10 = vld [vmem:[%s1656_s3 + $0x1f4] sm:$0xf0]  ;;  %465 = vmatpush.bf16.msra.mxu0 %v799_v3  ;;  %v1091_v15 = vld [vmem:[%s1656_s3 + $0xe4] sm:$0xf0] }
   0x5   :  { %v991_v12 = vor.u32 %v1125_v10, %v990_v9  ;;  %478 = vmatpush.bf16.msra.mxu1 %v863_v7  ;;  %v855_v17 = vor.u32 %v1091_v15, %v854_v14  ;;  %v918_v18 = vld [vmem:[%s1656_s3 + $0x160] sm:$0xf]  ;;  %v1107_v19 = vld [vmem:[%s1656_s3 + $0x164] sm:$0xf0]  ;;  %v782_v23 = vld [vmem:[%s1656_s3 + $0x50] sm:$0xf] }
   0x6   :  { %491 = vmatpush.bf16.msra.mxu2 %v927_v8  ;;  %v982_v20 = vld [vmem:[%s1656_s3 + $0x1e0] sm:$0xf]  ;;  %v919_v21 = vor.u32 %v1107_v19, %v918_v18  ;;  %v1123_v22 = vld [vmem:[%s1656_s3 + $0x1e4] sm:$0xf0]  ;;  %v1073_v24 = vld [vmem:[%s1656_s3 + $0x54] sm:$0xf0] }
   0x7   :  { %504 = vmatpush.bf16.msra.mxu3 %v991_v12  ;;  %v983_v25 = vor.u32 %v1123_v22, %v982_v20  ;;  %v846_v26 = vld [vmem:[%s1656_s3 + $0xd0] sm:$0xf]  ;;  %v1089_v27 = vld [vmem:[%s1656_s3 + $0xd4] sm:$0xf0]  ;;  %v783_v29 = vor.u32 %v1073_v24, %v782_v23  ;;  %v774_v35 = vld [vmem:[%s1656_s3 + $0x40] sm:$0xf] }
   0x8   :  { %v910_v28 = vld [vmem:[%s1656_s3 + $0x150] sm:$0xf]  ;;  %466 = vmatpush.bf16.msra.mxu0 %v791_v16  ;;  %v1105_v30 = vld [vmem:[%s1656_s3 + $0x154] sm:$0xf0]  ;;  %v847_v33 = vor.u32 %v1089_v27, %v846_v26  ;;  %v1071_v36 = vld [vmem:[%s1656_s3 + $0x44] sm:$0xf0] }
   0x9   :  { %v974_v31 = vld [vmem:[%s1656_s3 + $0x1d0] sm:$0xf]  ;;  %v1121_v32 = vld [vmem:[%s1656_s3 + $0x1d4] sm:$0xf0]  ;;  %479 = vmatpush.bf16.msra.mxu1 %v855_v17  ;;  %v911_v34 = vor.u32 %v1105_v30, %v910_v28  ;;  %v838_v37 = vld [vmem:[%s1656_s3 + $0xc0] sm:$0xf]  ;;  %v775_v44 = vor.u32 %v1071_v36, %v774_v35 }
   0xa   :  { %492 = vmatpush.bf16.msra.mxu2 %v919_v21  ;;  %v975_v38 = vor.u32 %v1121_v32, %v974_v31  ;;  %v1087_v39 = vld [vmem:[%s1656_s3 + $0xc4] sm:$0xf0]  ;;  %v902_v40 = vld [vmem:[%s1656_s3 + $0x140] sm:$0xf]  ;;  %v766_v47 = vld [vmem:[%s1656_s3 + $0x30] sm:$0xf] }
   0xb   :  { %505 = vmatpush.bf16.msra.mxu3 %v983_v25  ;;  %v1103_v41 = vld [vmem:[%s1656_s3 + $0x144] sm:$0xf0]  ;;  %v966_v42 = vld [vmem:[%s1656_s3 + $0x1c0] sm:$0xf]  ;;  %v839_v45 = vor.u32 %v1087_v39, %v838_v37  ;;  %v1069_v48 = vld [vmem:[%s1656_s3 + $0x34] sm:$0xf0] }
   0xc   :  { %v1119_v43 = vld [vmem:[%s1656_s3 + $0x1c4] sm:$0xf0]  ;;  %467 = vmatpush.bf16.msra.mxu0 %v783_v29  ;;  %v903_v46 = vor.u32 %v1103_v41, %v902_v40  ;;  %v830_v49 = vld [vmem:[%s1656_s3 + $0xb0] sm:$0xf]  ;;  %v1085_v51 = vld [vmem:[%s1656_s3 + $0xb4] sm:$0xf0]  ;;  %v767_v56 = vor.u32 %v1069_v48, %v766_v47 }
   0xd   :  { %480 = vmatpush.bf16.msra.mxu1 %v847_v33  ;;  %v967_v50 = vor.u32 %v1119_v43, %v966_v42  ;;  %v894_v52 = vld [vmem:[%s1656_s3 + $0x130] sm:$0xf]  ;;  %v1101_v53 = vld [vmem:[%s1656_s3 + $0x134] sm:$0xf0]  ;;  %v831_v57 = vor.u32 %v1085_v51, %v830_v49  ;;  %v758_v59 = vld [vmem:[%s1656_s3 + $0x20] sm:$0xf] }
   0xe   :  { %493 = vmatpush.bf16.msra.mxu2 %v911_v34  ;;  %v958_v54 = vld [vmem:[%s1656_s3 + $0x1b0] sm:$0xf]  ;;  %v1117_v55 = vld [vmem:[%s1656_s3 + $0x1b4] sm:$0xf0]  ;;  %v895_v58 = vor.u32 %v1101_v53, %v894_v52  ;;  %v1067_v60 = vld [vmem:[%s1656_s3 + $0x24] sm:$0xf0] }
   0xf   :  { %506 = vmatpush.bf16.msra.mxu3 %v975_v38  ;;  %v822_v61 = vld [vmem:[%s1656_s3 + $0xa0] sm:$0xf]  ;;  %v959_v62 = vor.u32 %v1117_v55, %v958_v54  ;;  %v1083_v63 = vld [vmem:[%s1656_s3 + $0xa4] sm:$0xf0]  ;;  %v759_v4 = vor.u32 %v1067_v60, %v758_v59  ;;  %v750_v7 = vld [vmem:[%s1656_s3 + $0x10] sm:$0xf] }
  0x10   :  { %468 = vmatpush.bf16.msra.mxu0 %v775_v44  ;;  %v886_v0 = vld [vmem:[%s1656_s3 + $0x120] sm:$0xf]  ;;  %v1099_v1 = vld [vmem:[%s1656_s3 + $0x124] sm:$0xf0]  ;;  %v823_v5 = vor.u32 %v1083_v63, %v822_v61  ;;  %v1065_v8 = vld [vmem:[%s1656_s3 + $0x14] sm:$0xf0] }
  0x11   :  { %481 = vmatpush.bf16.msra.mxu1 %v839_v45  ;;  %v950_v2 = vld [vmem:[%s1656_s3 + $0x1a0] sm:$0xf]  ;;  %v1115_v3 = vld [vmem:[%s1656_s3 + $0x1a4] sm:$0xf0]  ;;  %v887_v6 = vor.u32 %v1099_v1, %v886_v0  ;;  %v814_v9 = vld [vmem:[%s1656_s3 + $0x90] sm:$0xf]  ;;  %v751_v17 = vor.u32 %v1065_v8, %v750_v7 }
  0x12   :  { %494 = vmatpush.bf16.msra.mxu2 %v903_v46  ;;  %v951_v10 = vor.u32 %v1115_v3, %v950_v2  ;;  %v1081_v11 = vld [vmem:[%s1656_s3 + $0x94] sm:$0xf0]  ;;  %v878_v12 = vld [vmem:[%s1656_s3 + $0x110] sm:$0xf]  ;;  %v742_v16 = vld [vmem:[%s1656_s3] sm:$0xf] }
  0x13   :  { %507 = vmatpush.bf16.msra.mxu3 %v967_v50  ;;  %v1097_v13 = vld [vmem:[%s1656_s3 + $0x114] sm:$0xf0]  ;;  %v942_v14 = vld [vmem:[%s1656_s3 + $0x190] sm:$0xf]  ;;  %v1063_v18 = vld [vmem:[%s1656_s3 + $0x4] sm:$0xf0]  ;;  %v815_v21 = vor.u32 %v1081_v11, %v814_v9 }
  0x14   :  { %469 = vmatpush.bf16.msra.mxu0 %v767_v56  ;;  %v1113_v15 = vld [vmem:[%s1656_s3 + $0x194] sm:$0xf0]  ;;  %v806_v19 = vld [vmem:[%s1656_s3 + $0x80] sm:$0xf]  ;;  %v1079_v20 = vld [vmem:[%s1656_s3 + $0x84] sm:$0xf0]  ;;  %v879_v22 = vor.u32 %v1097_v13, %v878_v12  ;;  %v743_v33 = vor.u32 %v1063_v18, %v742_v16 }
  0x15   :  { %482 = vmatpush.bf16.msra.mxu1 %v831_v57  ;;  %v870_v23 = vld [vmem:[%s1656_s3 + $0x100] sm:$0xf]  ;;  %v1095_v24 = vld [vmem:[%s1656_s3 + $0x104] sm:$0xf0]  ;;  %v943_v26 = vor.u32 %v1113_v15, %v942_v14  ;;  %v1076_v28 = vld [vmem:[%s1656_s3 + $0x74] sm:$0xf]  ;;  %v807_v36 = vor.u32 %v1079_v20, %v806_v19 }
  0x16   :  { %495 = vmatpush.bf16.msra.mxu2 %v895_v58  ;;  %v934_v25 = vld [vmem:[%s1656_s3 + $0x180] sm:$0xf]  ;;  %v1111_v27 = vld [vmem:[%s1656_s3 + $0x184] sm:$0xf0]  ;;  %v800_v29 = vld [vmem:[%s1656_s3 + $0x78] sm:$0xf0]  ;;  %v871_v37 = vor.u32 %v1095_v24, %v870_v23 }
  0x17   :  { %508 = vmatpush.bf16.msra.mxu3 %v959_v62  ;;  %v1092_v30 = vld [vmem:[%s1656_s3 + $0xf4] sm:$0xf]  ;;  %v864_v31 = vld [vmem:[%s1656_s3 + $0xf8] sm:$0xf0]  ;;  %v26_v32 = vld [vmem:[%s1657_s0] sm:$0xff]  ;;  %v935_v40 = vor.u32 %v1111_v27, %v934_v25  ;;  %v803_v41 = vor.u32 %v1076_v28, %v800_v29 }
  0x18   :  { %470 = vmatpush.bf16.msra.mxu0 %v759_v4  ;;  %v1108_v34 = vld [vmem:[%s1656_s3 + $0x174] sm:$0xf]  ;;  %v928_v35 = vld [vmem:[%s1656_s3 + $0x178] sm:$0xf0]  ;;  %30 = vst [vmem:[#allocation1] ss:$4 sm:$0xff] %v26_v32  ;;  %v867_v44 = vor.u32 %v1092_v30, %v864_v31 }
  0x19   :  { %483 = vmatpush.bf16.msra.mxu1 %v823_v5  ;;  %v1124_v38 = vld [vmem:[%s1656_s3 + $0x1f4] sm:$0xf]  ;;  %v992_v39 = vld [vmem:[%s1656_s3 + $0x1f8] sm:$0xf0]  ;;  %v1074_v42 = vld [vmem:[%s1656_s3 + $0x64] sm:$0xf]  ;;  %v931_v45 = vor.u32 %v1108_v34, %v928_v35 }
  0x1a   :  { %496 = vmatpush.bf16.msra.mxu2 %v887_v6  ;;  %v792_v43 = vld [vmem:[%s1656_s3 + $0x68] sm:$0xf0]  ;;  %v1090_v46 = vld [vmem:[%s1656_s3 + $0xe4] sm:$0xf]  ;;  %v995_v49 = vor.u32 %v1124_v38, %v992_v39  ;;  %v1072_v54 = vld [vmem:[%s1656_s3 + $0x54] sm:$0xf] }
  0x1b   :  { %509 = vmatpush.bf16.msra.mxu3 %v951_v10  ;;  %v856_v47 = vld [vmem:[%s1656_s3 + $0xe8] sm:$0xf0]  ;;  %v1106_v48 = vld [vmem:[%s1656_s3 + $0x164] sm:$0xf]  ;;  %v784_v55 = vld [vmem:[%s1656_s3 + $0x58] sm:$0xf0]  ;;  %v795_v56 = vor.u32 %v1074_v42, %v792_v43 }
  0x1c   :  { %471 = vmatpush.bf16.msra.mxu0 %v751_v17  ;;  %v920_v50 = vld [vmem:[%s1656_s3 + $0x168] sm:$0xf0]  ;;  %v1122_v51 = vld [vmem:[%s1656_s3 + $0x1e4] sm:$0xf]  ;;  %v1088_v57 = vld [vmem:[%s1656_s3 + $0xd4] sm:$0xf]  ;;  %v859_v61 = vor.u32 %v1090_v46, %v856_v47  ;;  %v787_v6 = vor.u32 %v1072_v54, %v784_v55 }
  0x1d   :  { %484 = vmatpush.bf16.msra.mxu1 %v815_v21  ;;  %v984_v52 = vld [vmem:[%s1656_s3 + $0x1e8] sm:$0xf0]  ;;  %v27_v53 = vld [vmem:[%s1658_s1] sm:$0xff]  ;;  %v848_v58 = vld [vmem:[%s1656_s3 + $0xd8] sm:$0xf0]  ;;  %v923_v62 = vor.u32 %v1106_v48, %v920_v50 }
  0x1e   :  { %497 = vmatpush.bf16.msra.mxu2 %v879_v22  ;;  %v1104_v59 = vld [vmem:[%s1656_s3 + $0x154] sm:$0xf]  ;;  %v912_v60 = vld [vmem:[%s1656_s3 + $0x158] sm:$0xf0]  ;;  %v987_v1 = vor.u32 %v1122_v51, %v984_v52  ;;  %v1070_v7 = vld [vmem:[%s1656_s3 + $0x44] sm:$0xf]  ;;  %v851_v8 = vor.u32 %v1088_v57, %v848_v58 }
  0x1f   :  { %510 = vmatpush.bf16.msra.mxu3 %v943_v26  ;;  %v1447_v63 = vld.sshfl [vmem:[#allocation1] sm:$0xff pattern:$0x73625140]  ;;  %v1449_v0 = vld.sshfl [vmem:[#allocation1 + $0x8] sm:$0xff pattern:$0x73625140]  ;;  %v915_v9 = vor.u32 %v1104_v59, %v912_v60 }
  0x20   :  { %472 = vmatpush.bf16.msra.mxu0 %v743_v33  ;;  %v1451_v2 = vld.sshfl [vmem:[#allocation1 + $0x10] sm:$0xff pattern:$0x73625140]  ;;  %v1453_v3 = vld.sshfl [vmem:[#allocation1 + $0x18] sm:$0xff pattern:$0x73625140] }
  0x21   :  { %485 = vmatpush.bf16.msra.mxu1 %v807_v36  ;;  %41 = vst [vmem:[#allocation1 + $0x1] ss:$4 sm:$0xff] %v27_v53  ;;  %v1120_v4 = vld [vmem:[%s1656_s3 + $0x1d4] sm:$0xf]  ;;  %v976_v5 = vld [vmem:[%s1656_s3 + $0x1d8] sm:$0xf0] }
  0x22   :  { %498 = vmatpush.bf16.msra.mxu2 %v871_v37  ;;  %v776_v10 = vld [vmem:[%s1656_s3 + $0x48] sm:$0xf0]  ;;  %v1086_v11 = vld [vmem:[%s1656_s3 + $0xc4] sm:$0xf]  ;;  %v979_v13 = vor.u32 %v1120_v4, %v976_v5  ;;  %v1068_v19 = vld [vmem:[%s1656_s3 + $0x34] sm:$0xf] }
  0x23   :  { %511 = vmatpush.bf16.msra.mxu3 %v935_v40  ;;  %v840_v12 = vld [vmem:[%s1656_s3 + $0xc8] sm:$0xf0]  ;;  %v1102_v14 = vld [vmem:[%s1656_s3 + $0x144] sm:$0xf]  ;;  %v768_v20 = vld [vmem:[%s1656_s3 + $0x38] sm:$0xf0]  ;;  %v779_v21 = vor.u32 %v1070_v7, %v776_v10 }
  0x24   :  { %517 = vmatpush.bf16.msrb.mxu0 %v803_v41  ;;  %v904_v15 = vld [vmem:[%s1656_s3 + $0x148] sm:$0xf0]  ;;  %v1118_v16 = vld [vmem:[%s1656_s3 + $0x1c4] sm:$0xf]  ;;  %v1084_v22 = vld [vmem:[%s1656_s3 + $0xb4] sm:$0xf]  ;;  %v843_v25 = vor.u32 %v1086_v11, %v840_v12  ;;  %v771_v35 = vor.u32 %v1068_v19, %v768_v20 }
  0x25   :  { %530 = vmatpush.bf16.msrb.mxu1 %v867_v44  ;;  %v28_v17 = vld [vmem:[%s1659_s2] sm:$0xff]  ;;  %v968_v18 = vld [vmem:[%s1656_s3 + $0x1c8] sm:$0xf0]  ;;  %v832_v23 = vld [vmem:[%s1656_s3 + $0xb8] sm:$0xf0]  ;;  %v907_v26 = vor.u32 %v1102_v14, %v904_v15 }
  0x26   :  { %543 = vmatpush.bf16.msrb.mxu2 %v931_v45  ;;  %v1100_v24 = vld [vmem:[%s1656_s3 + $0x134] sm:$0xf]  ;;  %v896_v27 = vld [vmem:[%s1656_s3 + $0x138] sm:$0xf0]  ;;  %v971_v32 = vor.u32 %v1118_v16, %v968_v18  ;;  %v835_v36 = vor.u32 %v1084_v22, %v832_v23  ;;  %v1066_v38 = vld [vmem:[%s1656_s3 + $0x24] sm:$0xf] }
  0x27   :  { %556 = vmatpush.bf16.msrb.mxu3 %v995_v49  ;;  %v1116_v28 = vld [vmem:[%s1656_s3 + $0x1b4] sm:$0xf]  ;;  %v960_v29 = vld [vmem:[%s1656_s3 + $0x1b8] sm:$0xf0]  ;;  %v899_v37 = vor.u32 %v1100_v24, %v896_v27  ;;  %v760_v39 = vld [vmem:[%s1656_s3 + $0x28] sm:$0xf0] }
  0x28   :  { %518 = vmatpush.bf16.msrb.mxu0 %v795_v56  ;;  %v42_v30 = vld.sshfl [vmem:[#allocation1] sm:$0xff pattern:$0x73625140]  ;;  %v43_v31 = vld.sshfl [vmem:[#allocation1 + $0x8] sm:$0xff pattern:$0x73625140]  ;;  %v963_v40 = vor.u32 %v1116_v28, %v960_v29  ;;  %v763_v47 = vor.u32 %v1066_v38, %v760_v39 }
  0x29   :  { %531 = vmatpush.bf16.msrb.mxu1 %v859_v61  ;;  %v44_v33 = vld.sshfl [vmem:[#allocation1 + $0x10] sm:$0xff pattern:$0x73625140]  ;;  %v45_v34 = vld.sshfl [vmem:[#allocation1 + $0x18] sm:$0xff pattern:$0x73625140]  ;;  %v62_v52 = vsel %vm61_vm0, %v1447_v63, %v42_v30  ;;  %v63_v58 = vsel %vm61_vm0, %v1449_v0, %v43_v31 }
  0x2a   :  { %544 = vmatpush.bf16.msrb.mxu2 %v923_v62  ;;  %52 = vst [vmem:[#allocation1 + $0x2] ss:$4 sm:$0xff] %v28_v17  ;;  %v1082_v41 = vld [vmem:[%s1656_s3 + $0xa4] sm:$0xf]  ;;  %v824_v42 = vld [vmem:[%s1656_s3 + $0xa8] sm:$0xf0]  ;;  %v64_v51 = vsel %vm61_vm0, %v1451_v2, %v44_v33  ;;  %v65_v57 = vsel %vm61_vm0, %v1453_v3, %v45_v34 }
  0x2b   :  { %557 = vmatpush.bf16.msrb.mxu3 %v987_v1  ;;  %v1098_v43 = vld [vmem:[%s1656_s3 + $0x124] sm:$0xf]  ;;  %v888_v44 = vld [vmem:[%s1656_s3 + $0x128] sm:$0xf0]  ;;  %v1064_v48 = vld [vmem:[%s1656_s3 + $0x14] sm:$0xf]  ;;  %v827_v53 = vor.u32 %v1082_v41, %v824_v42 }
  0x2c   :  { %519 = vmatpush.bf16.msrb.mxu0 %v787_v6  ;;  %v1114_v45 = vld [vmem:[%s1656_s3 + $0x1a4] sm:$0xf]  ;;  %v952_v46 = vld [vmem:[%s1656_s3 + $0x1a8] sm:$0xf0]  ;;  %v752_v49 = vld [vmem:[%s1656_s3 + $0x18] sm:$0xf0]  ;;  %v891_v59 = vor.u32 %v1098_v43, %v888_v44 }
  0x2d   :  { %532 = vmatpush.bf16.msrb.mxu1 %v851_v8  ;;  %v1080_v50 = vld [vmem:[%s1656_s3 + $0x94] sm:$0xf]  ;;  %v816_v54 = vld [vmem:[%s1656_s3 + $0x98] sm:$0xf0]  ;;  %v955_v60 = vor.u32 %v1114_v45, %v952_v46  ;;  %v755_v2 = vor.u32 %v1064_v48, %v752_v49  ;;  %v1062_v12 = vld [vmem:[%s1656_s3 + $0x4] sm:$0xf] }
  0x2e   :  { %545 = vmatpush.bf16.msrb.mxu2 %v915_v9  ;;  %v1096_v55 = vld [vmem:[%s1656_s3 + $0x114] sm:$0xf]  ;;  %v880_v56 = vld [vmem:[%s1656_s3 + $0x118] sm:$0xf0]  ;;  %v819_v6 = vor.u32 %v1080_v50, %v816_v54  ;;  %v1078_v17 = vld [vmem:[%s1656_s3 + $0x84] sm:$0xf] }
  0x2f   :  { %558 = vmatpush.bf16.msrb.mxu3 %v979_v13  ;;  %v1112_v61 = vld [vmem:[%s1656_s3 + $0x194] sm:$0xf]  ;;  %v944_v62 = vld [vmem:[%s1656_s3 + $0x198] sm:$0xf0]  ;;  %v883_v7 = vor.u32 %v1096_v55, %v880_v56  ;;  %v744_v13 = vld [vmem:[%s1656_s3 + $0x8] sm:$0xf0] }
  0x30   :  { %520 = vmatpush.bf16.msrb.mxu0 %v779_v21  ;;  %v947_v16 = vor.u32 %v1112_v61, %v944_v62  ;;  %v808_v18 = vld [vmem:[%s1656_s3 + $0x88] sm:$0xf0]  ;;  %v1094_v19 = vld [vmem:[%s1656_s3 + $0x104] sm:$0xf]  ;;  %v747_v23 = vor.u32 %v1062_v12, %v744_v13  ;;  %v1133_v27 = vld [vmem:[%s1660_s5 + $0x38] sm:$0xff] }
  0x31   :  { %533 = vmatpush.bf16.msrb.mxu1 %v843_v25  ;;  %v55_v63 = vld.sshfl [vmem:[#allocation1 + $0x10] sm:$0xff pattern:$0x73625140]  ;;  %v53_v1 = vld.sshfl [vmem:[#allocation1] sm:$0xff pattern:$0x73625140]  ;;  %v811_v24 = vor.u32 %v1078_v17, %v808_v18 }
  0x32   :  { %546 = vmatpush.bf16.msrb.mxu2 %v907_v26  ;;  %v69_v4 = vsel %vm66_vm1, %v64_v51, %v55_v63  ;;  %v67_v3 = vsel %vm66_vm1, %v62_v52, %v53_v1  ;;  %v56_v5 = vld.sshfl [vmem:[#allocation1 + $0x18] sm:$0xff pattern:$0x73625140]  ;;  %v54_v0 = vld.sshfl [vmem:[#allocation1 + $0x8] sm:$0xff pattern:$0x73625140] }
  0x33   :  { %559 = vmatpush.bf16.msrb.mxu3 %v971_v32  ;;  %v73_v8 = vpack.c.bf16 %v69_v4, %v69_v4  ;;  %v71_v9 = vpack.c.bf16 %v67_v3, %v67_v3  ;;  %v70_v10 = vsel %vm66_vm1, %v65_v57, %v56_v5  ;;  %v68_v11 = vsel %vm66_vm1, %v63_v58, %v54_v0  ;;  %v872_v20 = vld [vmem:[%s1656_s3 + $0x108] sm:$0xf0]  ;;  %v1110_v21 = vld [vmem:[%s1656_s3 + $0x184] sm:$0xf]  ;;  %v1132_v28 = vld [vmem:[%s1660_s5 + $0x30] sm:$0xff] }
  0x34   :  { %521 = vmatpush.bf16.msrb.mxu0 %v771_v35  ;;  %v74_v14 = vpack.c.bf16 %v70_v10, %v70_v10  ;;  %v72_v15 = vpack.c.bf16 %v68_v11, %v68_v11  ;;  %v936_v22 = vld [vmem:[%s1656_s3 + $0x188] sm:$0xf0]  ;;  %v875_v25 = vor.u32 %v1094_v19, %v872_v20  ;;  %v1130_v30 = vld [vmem:[%s1660_s5 + $0x20] sm:$0xff]  ;;  %v1129_v31 = vld [vmem:[%s1660_s5 + $0x18] sm:$0xff] }
  0x35   :  { %534 = vmatpush.bf16.msrb.mxu1 %v835_v36  ;;  %499 = vmatmul.bf16.vlgmr.msra.gmra.mxu2 %v73_v8  ;;  %v939_v26 = vor.u32 %v1110_v21, %v936_v22  ;;  %v1131_v29 = vld [vmem:[%s1660_s5 + $0x28] sm:$0xff]  ;;  %v1128_v32 = vld [vmem:[%s1660_s5 + $0x10] sm:$0xff]  ;;  %v1141_v34 = vld [vmem:[%s1660_s5 + $0x78] sm:$0xff] }
  0x36   :  { %547 = vmatpush.bf16.msrb.mxu2 %v899_v37  ;;  %473 = vmatmul.bf16.vlgmr.msra.gmra.mxu0 %v71_v9  ;;  %v1127_v33 = vld [vmem:[%s1660_s5 + $0x8] sm:$0xff]  ;;  %v1126_v35 = vld [vmem:[%s1660_s5] sm:$0xff]  ;;  %v1140_v36 = vld [vmem:[%s1660_s5 + $0x70] sm:$0xff] }
  0x37   :  { %560 = vmatpush.bf16.msrb.mxu3 %v963_v40  ;;  %486 = vmatmul.bf16.vlgmr.msra.gmra.mxu1 %v72_v15  ;;  %v1139_v37 = vld [vmem:[%s1660_s5 + $0x68] sm:$0xff]  ;;  %v1138_v38 = vld [vmem:[%s1660_s5 + $0x60] sm:$0xff]  ;;  %v1137_v39 = vld [vmem:[%s1660_s5 + $0x58] sm:$0xff] }
  0x38   :  { %522 = vmatpush.bf16.msrb.mxu0 %v763_v47  ;;  %512 = vmatmul.bf16.vlgmr.msra.gmra.mxu3 %v74_v14  ;;  %v1136_v40 = vld [vmem:[%s1660_s5 + $0x50] sm:$0xff]  ;;  %v139_v41 = vld [vmem:[%s1662_s4] sm:$0x3]  ;;  %v1135_v43 = vld [vmem:[%s1660_s5 + $0x48] sm:$0xff] }
  0x39   :  { %535 = vmatpush.bf16.msrb.mxu1 %v827_v53  ;;  %v141_v42 = vperm.slane %v139_v41, 0  ;;  %v1134_v45 = vld [vmem:[%s1660_s5 + $0x40] sm:$0xff]  ;;  %v142_v57 = vperm.slane %v139_v41, 1 }
  0x3a   :  { %548 = vmatpush.bf16.msrb.mxu2 %v891_v59  ;;  %v1142_v12 = vld [vmem:[%s1661_s6] ss:$0 sm:$0xff] }
  0x3b   :  { %561 = vmatpush.bf16.msrb.mxu3 %v955_v60 }
  0x3c   :  { %523 = vmatpush.bf16.msrb.mxu0 %v755_v2 }
  0x3d   :  { %536 = vmatpush.bf16.msrb.mxu1 %v819_v6 }
  0x3e   :  { %549 = vmatpush.bf16.msrb.mxu2 %v883_v7 }
  0x3f   :  { %562 = vmatpush.bf16.msrb.mxu3 %v947_v16 }
  0x40   :  { %524 = vmatpush.bf16.msrb.mxu0 %v747_v23 }
  0x41   :  { %537 = vmatpush.bf16.msrb.mxu1 %v811_v24 }
  0x42   :  { %550 = vmatpush.bf16.msrb.mxu2 %v875_v25 }
  0x43   :  { %563 = vmatpush.bf16.msrb.mxu3 %v939_v26 }
  0x44   :  { %705 = vmatpush.bf16.msra.mxu0 %v1133_v27 }
  0x45   :  { %551 = vmatmul.bf16.vlgmr.msrb.gmra.mxu2 %v73_v8  ;;  %718 = vmatpush.bf16.msra.mxu1 %v1141_v34 }
  0x46   :  { %525 = vmatmul.bf16.vlgmr.msrb.gmra.mxu0 %v71_v9 }
  0x47   :  { %538 = vmatmul.bf16.vlgmr.msrb.gmra.mxu1 %v72_v15 }
  0x48   :  { %706 = vmatpush.bf16.msra.mxu0 %v1132_v28  ;;  %564 = vmatmul.bf16.vlgmr.msrb.gmra.mxu3 %v74_v14 }
  0x49   :  { %719 = vmatpush.bf16.msra.mxu1 %v1140_v36 }
  0x4c   :  { %707 = vmatpush.bf16.msra.mxu0 %v1131_v29 }
  0x4d   :  { %720 = vmatpush.bf16.msra.mxu1 %v1139_v37 }
  0x50   :  { %708 = vmatpush.bf16.msra.mxu0 %v1130_v30 }
  0x51   :  { %721 = vmatpush.bf16.msra.mxu1 %v1138_v38 }
  0x54   :  { %709 = vmatpush.bf16.msra.mxu0 %v1129_v31 }
  0x55   :  { %722 = vmatpush.bf16.msra.mxu1 %v1137_v39 }
  0x58   :  { %710 = vmatpush.bf16.msra.mxu0 %v1128_v32 }
  0x59   :  { %723 = vmatpush.bf16.msra.mxu1 %v1136_v40 }
  0x5c   :  { %711 = vmatpush.bf16.msra.mxu0 %v1127_v33 }
  0x5d   :  { %724 = vmatpush.bf16.msra.mxu1 %v1135_v43 }
  0x60   :  { %712 = vmatpush.bf16.msra.mxu0 %v1126_v35 }
  0x61   :  { %725 = vmatpush.bf16.msra.mxu1 %v1134_v45 }
  0xb3   :  { %v474_v44 = vpop.f32.mrf.mxu0 }
  0xb4   :  { %v475_v46 = vadd.f32 %v474_v44, %v141_v42  ;;  %v487_v47 = vpop.f32.mrf.mxu1 }
  0xb6   :  { %v488_v48 = vadd.f32 %v487_v47, %v475_v46 }
  0xb8   :  { %v500_v49 = vpop.f32.mrf.mxu2 }
  0xb9   :  { %v501_v50 = vadd.f32 %v500_v49, %v488_v48 }
  0xbb   :  { %v513_v51 = vpop.f32.mrf.mxu3  ;;  %v476_v52 = vpop.f32.mrf.mxu0 }
  0xbc   :  { %v514_v53 = vadd.f32 %v513_v51, %v501_v50  ;;  %v489_v54 = vpop.f32.mrf.mxu1 }
  0xbe   :  { %v569_v55 = vmax.f32 %v514_v53, 0.0 }
  0xc0   :  { %v571_v56 = vpack.c.bf16 %v569_v55, %v569_v55  ;;  %v502_v58 = vpop.f32.mrf.mxu2 }
  0xc2   :  { %713 = vmatmul.bf16.vlgmr.msra.gmra.mxu0 %v571_v56 }
  0xc3   :  { %v515_v59 = vpop.f32.mrf.mxu3  ;;  %v526_v60 = vpop.f32.mrf.mxu0 }
  0xc4   :  { %v527_v61 = vadd.f32 %v526_v60, %v142_v57  ;;  %v539_v62 = vpop.f32.mrf.mxu1 }
  0xc6   :  { %v540_v63 = vadd.f32 %v539_v62, %v527_v61 }
  0xc8   :  { %v552_v1 = vpop.f32.mrf.mxu2 }
  0xc9   :  { %v553_v2 = vadd.f32 %v552_v1, %v540_v63 }
  0xcb   :  { %v565_v4 = vpop.f32.mrf.mxu3  ;;  %v528_v3 = vpop.f32.mrf.mxu0 }
  0xcc   :  { %v566_v5 = vadd.f32 %v565_v4, %v553_v2  ;;  %v541_v0 = vpop.f32.mrf.mxu1 }
  0xce   :  { %v570_v6 = vmax.f32 %v566_v5, 0.0 }
  0xd0   :  { %v572_v7 = vpack.c.bf16 %v570_v6, %v570_v6  ;;  %v554_v8 = vpop.f32.mrf.mxu2 }
  0xd2   :  { %726 = vmatmul.bf16.vlgmr.msra.gmra.mxu1 %v572_v7 }
  0xd3   :  { %v567_v9 = vpop.f32.mrf.mxu3 }
 0x13f   :  { %v714_v10 = vpop.f32.mrf.mxu0 }
 0x140   :  { %v715_v13 = vadd.f32 %v1142_v12, %v714_v10 }
 0x147   :  { %v716_v11 = vpop.f32.mrf.mxu0 }
 0x14f   :  { %v727_v14 = vpop.f32.mrf.mxu1 }
 0x150   :  { %v728_v15 = vadd.f32 %v727_v14, %v715_v13 }
 0x152   :  { %731 = vst [vmem:[%s1663_s7] sm:$0xf] %v728_v15  }
 0x153   :  { %1061 = vst [vmem:[%s1663_s7] sm:$0x30] %v728_v15 }
 0x157   :  { %v729_v16 = vpop.f32.mrf.mxu1 }

</bundles_post_ra>
